<compile_context>
chip_gen: v5e
topology: v5e:2x2
jax: 0.10.0
libtpu: 0.0.40
codegen_flags: <defaults>
</compile_context>

<pallas_src>
import functools

import jax
import jax.numpy as jnp
from jax.experimental import pallas as pl
from jax.experimental.pallas import tpu as pltpu

BN_EPS = 1e-5
NEG_SLOPE = 0.1


# -----------------------------------------------------------------------------
# Fused kernel: all conv+BN+LeakyReLU layers + MaxPool. One grid step = one
# batch tile of `nb` sequences stacked along the row (sublane) axis.
# -----------------------------------------------------------------------------
def _fused_block_kernel(*refs, n_layers, nb, seq_len, true_len, pool, l_out,
                        neg_slope, packed_taps):
    # refs = (x, (w, scale, shift) * n_layers, out[, pool_buf])
    x_ref = refs[0]
    o_ref = refs[1 + 3 * n_layers]
    pool_buf = refs[2 + 3 * n_layers] if pool > 1 else None

    m = x_ref.shape[0]                        # rows in this tile = nb * seq_len

    # Rows on a sequence boundary: after the (wrapping) roll their +/-1 neighbour
    # belongs to another sequence / the conv's zero padding -> mask to zero.
    row = jax.lax.broadcasted_iota(jnp.int32, (m, 1), 0)
    pos = row % seq_len
    is_first = pos == 0
    is_last = pos == (true_len - 1)

    act = x_ref[...].astype(jnp.float32)      # (m, C0) activation, f32 carry

    for li in range(n_layers):
        w_ref = refs[1 + 3 * li]              # (3, Cin, Cout) or (3*Cin, Cout) bf16
        sc = refs[2 + 3 * li][...]            # (1, Cout) f32: gamma/sqrt(var+eps)
        sh = refs[3 + 3 * li][...]            # (1, Cout) f32: beta - mean*sc + b*sc

        # k=3 halo via XLU sublane rotations (no VMEM staging).
        prev = jnp.where(is_first, 0.0, pltpu.roll(act, shift=1, axis=0))
        nxt = jnp.where(is_last, 0.0, pltpu.roll(act, shift=m - 1, axis=0))

        if packed_taps[li]:
            # One MXU pass with K = 3*Cin (lane concat is cheap when Cin % 128 == 0).
            operand = jnp.concatenate([prev, act, nxt], axis=-1).astype(jnp.bfloat16)
            acc = jnp.dot(operand, w_ref[...], preferred_element_type=jnp.float32)
        else:
            acc = jnp.dot(prev.astype(jnp.bfloat16), w_ref[0],
                          preferred_element_type=jnp.float32)
            acc = acc + jnp.dot(act.astype(jnp.bfloat16), w_ref[1],
                                preferred_element_type=jnp.float32)
            acc = acc + jnp.dot(nxt.astype(jnp.bfloat16), w_ref[2],
                                preferred_element_type=jnp.float32)

        y = acc * sc + sh                     # folded BatchNorm(eval) + conv bias
        act = jnp.maximum(y, neg_slope * y)   # LeakyReLU(0.1): one mul + one max

    if pool > 1:
        # Running max over `pool` rolled copies (XLU), then one strided selection.
        b = act
        for j in range(1, pool):
            b = jnp.maximum(b, pltpu.roll(act, shift=m - j, axis=0))
        pool_buf[...] = b
        if seq_len == l_out * pool:
            o_ref[...] = pool_buf[pl.ds(0, nb * l_out, stride=pool), :].astype(
                o_ref.dtype)
        else:
            # Ragged pool or padded length: per-sequence strided selection.
            for q in range(nb):
                o_ref[pl.ds(q * l_out, l_out), :] = pool_buf[
                    pl.ds(q * seq_len, l_out, stride=pool), :].astype(o_ref.dtype)
    else:
        if seq_len == true_len:
            o_ref[...] = act.astype(o_ref.dtype)
        else:
            # Drop the per-sequence length padding.
            for q in range(nb):
                o_ref[pl.ds(q * true_len, true_len), :] = act[
                    q * seq_len:q * seq_len + true_len, :].astype(o_ref.dtype)


# -----------------------------------------------------------------------------
# Wrapper helpers
# -----------------------------------------------------------------------------
def _round_up(x, mult):
    return -(-x // mult) * mult


def _pick_batch_tile(n, seq_len, out_len, c_max, target_rows=1024,
                     budget_bytes=4 << 20):
    """Batch elements per grid step. Enough rows to amortize the ~0.35us per-step
    overhead, capped by a conservative VMEM working-set budget (safe for v7x's
    smaller VMEM), satisfying the block-shape divisibility rules, and preferring
    >=2 grid steps so the "parallel" axis can split across v7x's TensorCores."""
    per_elem = max(seq_len * c_max * 24, 1)          # rough per-element working set
    cap = max(1, min(n, budget_bytes // per_elem))
    want = max(1, min(cap, -(-target_rows // seq_len)))

    def valid(nb):
        if n % nb != 0:
            return False
        rows_ok = (nb * seq_len) % 16 == 0 or nb == n     # bf16 input block rows
        out_ok = (nb * out_len) % 8 == 0 or nb == n       # f32 output block rows
        return rows_ok and out_ok

    if n > 1:
        for cand in range(min(want, n // 2), 0, -1):      # keep >= 2 grid steps
            if valid(cand):
                return cand
    for cand in range(min(want, n), 0, -1):
        if valid(cand):
            return cand
    return n                                              # always valid


# -----------------------------------------------------------------------------
# Forward
# -----------------------------------------------------------------------------
@functools.partial(jax.jit, static_argnames=("pool_size",))
def basic_conv_block_forward(x_ncl, layers, pool_size):
    """x_ncl: (N, C0, L) float. layers: list of (w, b, gamma, beta, mean, var)."""
    n, c0, length = x_ncl.shape
    n_layers = len(layers)
    channels = [c0] + [w.shape[0] for (w, *_rest) in layers]
    c_last = channels[-1]
    c_max = max(channels)

    pool = pool_size if pool_size > 1 else 1
    l_out = length // pool if pool > 1 else length
    out_len = l_out if pool > 1 else length

    seq_len = _round_up(length, 8)        # pad L so row blocks are 8-aligned
    nb = _pick_batch_tile(n, seq_len, out_len, c_max)
    grid = (n // nb,)

    # Fold BatchNorm (eval, running stats) + conv bias into per-channel
    # scale/shift; reorder weights so tap k pairs with the x[l-1+k] neighbour.
    operands, in_specs, packed_taps = [], [], []
    in_specs.append(pl.BlockSpec((nb * seq_len, c0), lambda i: (i, 0)))
    for (w, b, gamma, beta, mean, var) in layers:
        cout, cin, _k = w.shape
        scale = gamma / jnp.sqrt(var + BN_EPS)                  # (Cout,)
        shift = beta - mean * scale + b * scale                 # (Cout,)
        w_k = jnp.transpose(w, (2, 1, 0)).astype(jnp.bfloat16)  # (3, Cin, Cout)
        packed = (cin % 128 == 0)                               # v5e/v6e K-packing
        packed_taps.append(packed)
        if packed:
            w_k = w_k.reshape(3 * cin, cout)
            in_specs.append(pl.BlockSpec(w_k.shape, lambda i: (0, 0)))
        else:
            in_specs.append(pl.BlockSpec(w_k.shape, lambda i: (0, 0, 0)))
        sc = scale[None, :].astype(jnp.float32)
        sh = shift[None, :].astype(jnp.float32)
        in_specs.append(pl.BlockSpec(sc.shape, lambda i: (0, 0)))
        in_specs.append(pl.BlockSpec(sh.shape, lambda i: (0, 0)))
        operands += [w_k, sc, sh]

    # NCL -> (N*Lpad, C0) in bf16: channels on lanes, batch*length on the matmul
    # M axis; input DMA bytes halved vs f32.
    # TODO(synk): the NCL<->(N*L,C) boundary transposes are separate XLA HBM
    # passes; an NCL-native layout (L on lanes) would avoid them but needs a
    # lane-dense (>=128) store path for small channel counts.
    x_nlc = jnp.transpose(x_ncl, (0, 2, 1)).astype(jnp.bfloat16)
    if seq_len != length:
        x_nlc = jnp.pad(x_nlc, ((0, 0), (0, seq_len - length), (0, 0)))
    x2d = x_nlc.reshape(n * seq_len, c0)

    kernel = functools.partial(
        _fused_block_kernel, n_layers=n_layers, nb=nb, seq_len=seq_len,
        true_len=length, pool=pool, l_out=l_out, neg_slope=NEG_SLOPE,
        packed_taps=tuple(packed_taps))

    scratch = [pltpu.VMEM((nb * seq_len, c_last), jnp.float32)] if pool > 1 else []

    out2d = pl.pallas_call(
        kernel,
        out_shape=jax.ShapeDtypeStruct((n * out_len, c_last), jnp.float32),
        grid=grid,
        in_specs=in_specs,
        out_specs=pl.BlockSpec((nb * out_len, c_last), lambda i: (i, 0)),
        scratch_shapes=scratch,
        compiler_params=pltpu.CompilerParams(
            dimension_semantics=("parallel",),
            # >= scoped default on all generations, <= v7x's 64 MiB physical;
            # the tile budget keeps the working set far below this.
            vmem_limit_bytes=32 << 20),
    )(x2d, *operands)

    # (N*L_out, C_last) -> NCL
    out = jnp.transpose(out2d.reshape(n, out_len, c_last), (0, 2, 1))
    # TODO(synk): training-mode dropout (RNG mask) not emitted; eval semantics
    # (identity), matching F.dropout(training=False).
    return out


# -----------------------------------------------------------------------------
# Module
# -----------------------------------------------------------------------------
class BasicConvBlockPallas:
    """Eval-mode forward of the PyTorch BasicConvBlock."""

    def __init__(self, channel_list, dropout=0.5, pool_size=2, key=None):
        assert len(channel_list) >= 2
        self.dropout = dropout
        self.pool_size = pool_size
        key = jax.random.PRNGKey(0) if key is None else key
        self.layers = []
        for i in range(len(channel_list) - 1):
            cin, cout = channel_list[i], channel_list[i + 1]
            key, kw, kb, kg, kbt, km, kv = jax.random.split(key, 7)
            w = jax.random.normal(kw, (cout, cin, 3), jnp.float32) * 0.1
            b = jax.random.normal(kb, (cout,), jnp.float32) * 0.05
            # Non-trivial BN running stats to exercise the scale/shift fold.
            gamma = 1.0 + 0.1 * jax.random.normal(kg, (cout,), jnp.float32)
            beta = 0.1 * jax.random.normal(kbt, (cout,), jnp.float32)
            running_mean = 0.1 * jax.random.normal(km, (cout,), jnp.float32)
            running_var = 1.0 + 0.1 * jax.random.uniform(kv, (cout,), jnp.float32)
            self.layers.append((w, b, gamma, beta, running_mean, running_var))

    def __call__(self, x_ncl):
        return basic_conv_block_forward(x_ncl, self.layers,
                                        pool_size=self.pool_size)


# -----------------------------------------------------------------------------
# Pure-JAX reference (for correctness check)
# -----------------------------------------------------------------------------
def _ref_forward(x_ncl, layers, pool_size):
    x = x_ncl.astype(jnp.float32)
    for (w, b, gamma, beta, mean, var) in layers:
        x = jax.lax.conv_general_dilated(
            x, w, window_strides=(1,), padding=((1, 1),),
            dimension_numbers=("NCH", "OIH", "NCH"))
        x = x + b[None, :, None]
        x = gamma[None, :, None] * (x - mean[None, :, None]) / \
            jnp.sqrt(var[None, :, None] + BN_EPS) + beta[None, :, None]
        x = jnp.where(x > 0, x, NEG_SLOPE * x)
    if pool_size > 1:
        n, c, length = x.shape
        l_out = length // pool_size
        x = x[:, :, :l_out * pool_size].reshape(n, c, l_out, pool_size).max(-1)
    return x


if __name__ == "__main__":
    channel_list = [4, 8, 16]
    batch, length = 2, 16

    key = jax.random.PRNGKey(0)
    x = jax.random.normal(key, (batch, channel_list[0], length), jnp.float32)

    block = BasicConvBlockPallas(channel_list, dropout=0.5, pool_size=2,
                                 key=jax.random.PRNGKey(0))
    out = jax.block_until_ready(block(x))

    ref = _ref_forward(x, block.layers, block.pool_size)
    assert out.shape == ref.shape, (out.shape, ref.shape)
    # bf16 input + bf16 MXU operands (f32 accumulation) => bf16-level tolerance.
    assert jnp.allclose(out, ref, rtol=2e-2, atol=2e-2), \
        float(jnp.max(jnp.abs(out - ref)))

    print("KERNEL_OK")
</pallas_src>

<mosaic_0001>
module attributes {stable_mosaic.version = 11 : i64} {
  func.func @_fused_block_kernel(%arg0: i32, %arg1: memref<16x4xbf16, #tpu.memory_space<vmem>>, %arg2: memref<3x4x8xbf16, #tpu.memory_space<vmem>>, %arg3: memref<1x8xf32, #tpu.memory_space<vmem>>, %arg4: memref<1x8xf32, #tpu.memory_space<vmem>>, %arg5: memref<3x8x16xbf16, #tpu.memory_space<vmem>>, %arg6: memref<1x16xf32, #tpu.memory_space<vmem>>, %arg7: memref<1x16xf32, #tpu.memory_space<vmem>>, %arg8: memref<8x16xf32, #tpu.memory_space<vmem>>, %arg9: memref<16x16xf32, #tpu.memory_space<vmem>>) attributes {dimension_semantics = [#tpu.dimension_semantics<parallel>], iteration_bounds = array<i64: 2>, scalar_prefetch = 0 : i64, scratch_operands = 1 : i64, tpu.core_type = #tpu.core_type<tc>, window_params = [{transform_indices = @transform_0, window_bounds = array<i64: 16, 4>}, {pipeline_mode = #tpu.pipeline_mode<synchronous>, transform_indices = @transform_1, window_bounds = array<i64: 3, 4, 8>}, {pipeline_mode = #tpu.pipeline_mode<synchronous>, transform_indices = @transform_2, window_bounds = array<i64: 1, 8>}, {pipeline_mode = #tpu.pipeline_mode<synchronous>, transform_indices = @transform_3, window_bounds = array<i64: 1, 8>}, {pipeline_mode = #tpu.pipeline_mode<synchronous>, transform_indices = @transform_4, window_bounds = array<i64: 3, 8, 16>}, {pipeline_mode = #tpu.pipeline_mode<synchronous>, transform_indices = @transform_5, window_bounds = array<i64: 1, 16>}, {pipeline_mode = #tpu.pipeline_mode<synchronous>, transform_indices = @transform_6, window_bounds = array<i64: 1, 16>}, {transform_indices = @transform_7, window_bounds = array<i64: 8, 16>}]} {
    %0 = tpu.iota {dimensions = array<i32: 0>} : vector<16x1xi32>
    %c16_i32 = arith.constant 16 : i32
    %c0_i32 = arith.constant 0 : i32
    %1 = arith.cmpi eq, %c16_i32, %c0_i32 : i32
    %c1_i32 = arith.constant 1 : i32
    %2 = arith.select %1, %c1_i32, %c16_i32 : i32
    %3 = vector.broadcast %2 : i32 to vector<16x1xi32>
    %4 = arith.remsi %0, %3 : vector<16x1xi32>
    %c0_i32_0 = arith.constant 0 : i32
    %5 = vector.broadcast %c0_i32_0 : i32 to vector<16x1xi32>
    %6 = arith.cmpi ne, %4, %5 : vector<16x1xi32>
    %c0_i32_1 = arith.constant 0 : i32
    %7 = vector.broadcast %c0_i32_1 : i32 to vector<16x1xi32>
    %8 = arith.cmpi slt, %4, %7 : vector<16x1xi32>
    %c0_i32_2 = arith.constant 0 : i32
    %9 = arith.cmpi slt, %2, %c0_i32_2 : i32
    %10 = vector.broadcast %9 : i1 to vector<16x1xi1>
    %11 = vector.broadcast %10 : vector<16x1xi1> to vector<16x1xi1>
    %12 = arith.xori %8, %11 : vector<16x1xi1>
    %13 = arith.andi %12, %6 : vector<16x1xi1>
    %14 = vector.broadcast %2 : i32 to vector<16x1xi32>
    %15 = arith.addi %4, %14 : vector<16x1xi32>
    %16 = arith.select %13, %15, %4 : vector<16x1xi1>, vector<16x1xi32>
    %c0_i32_3 = arith.constant 0 : i32
    %17 = vector.broadcast %c0_i32_3 : i32 to vector<16x1xi32>
    %18 = arith.cmpi eq, %16, %17 : vector<16x1xi32>
    %c15_i32 = arith.constant 15 : i32
    %19 = vector.broadcast %c15_i32 : i32 to vector<16x1xi32>
    %20 = arith.cmpi eq, %16, %19 : vector<16x1xi32>
    %c0 = arith.constant 0 : index
    %c0_4 = arith.constant 0 : index
    %21 = vector.load %arg1[%c0, %c0_4] : memref<16x4xbf16, #tpu.memory_space<vmem>>, vector<16x4xbf16>
    %22 = arith.extf %21 : vector<16x4xbf16> to vector<16x4xf32>
    %c0_5 = arith.constant 0 : index
    %c0_6 = arith.constant 0 : index
    %23 = vector.load %arg3[%c0_5, %c0_6] : memref<1x8xf32, #tpu.memory_space<vmem>>, vector<1x8xf32>
    %c0_7 = arith.constant 0 : index
    %c0_8 = arith.constant 0 : index
    %24 = vector.load %arg4[%c0_7, %c0_8] : memref<1x8xf32, #tpu.memory_space<vmem>>, vector<1x8xf32>
    %c1_i32_9 = arith.constant 1 : i32
    %25 = tpu.dynamic_rotate %22 by %c1_i32_9 dim 0 : vector<16x4xf32>, i32 -> vector<16x4xf32>
    %cst = arith.constant 0.000000e+00 : f32
    %26 = vector.shape_cast %18 : vector<16x1xi1> to vector<16x1xi1>
    %27 = vector.broadcast %26 : vector<16x1xi1> to vector<16x4xi1>
    %28 = vector.broadcast %cst : f32 to vector<16x4xf32>
    %29 = arith.select %27, %28, %25 : vector<16x4xi1>, vector<16x4xf32>
    %c15_i32_10 = arith.constant 15 : i32
    %30 = tpu.dynamic_rotate %22 by %c15_i32_10 dim 0 : vector<16x4xf32>, i32 -> vector<16x4xf32>
    %cst_11 = arith.constant 0.000000e+00 : f32
    %31 = vector.shape_cast %20 : vector<16x1xi1> to vector<16x1xi1>
    %32 = vector.broadcast %31 : vector<16x1xi1> to vector<16x4xi1>
    %33 = vector.broadcast %cst_11 : f32 to vector<16x4xf32>
    %34 = arith.select %32, %33, %30 : vector<16x4xi1>, vector<16x4xf32>
    %35 = arith.truncf %29 : vector<16x4xf32> to vector<16x4xbf16>
    %c0_12 = arith.constant 0 : index
    %c0_13 = arith.constant 0 : index
    %c0_14 = arith.constant 0 : index
    %36 = vector.load %arg2[%c0_12, %c0_13, %c0_14] : memref<3x4x8xbf16, #tpu.memory_space<vmem>>, vector<1x4x8xbf16>
    %37 = vector.shape_cast %36 : vector<1x4x8xbf16> to vector<4x8xbf16>
    %cst_15 = arith.constant dense<0.000000e+00> : vector<16x8xf32>
    %38 = tpu.matmul %35, %37, %cst_15 {dimension_numbers = #tpu.dot_dimension_numbers<[1], [0], [0], [1], [0, 0, 1, 1], [], []>} : vector<16x4xbf16>, vector<4x8xbf16>, vector<16x8xf32> -> vector<16x8xf32>
    %39 = arith.truncf %22 : vector<16x4xf32> to vector<16x4xbf16>
    %c1 = arith.constant 1 : index
    %c0_16 = arith.constant 0 : index
    %c0_17 = arith.constant 0 : index
    %40 = vector.load %arg2[%c1, %c0_16, %c0_17] : memref<3x4x8xbf16, #tpu.memory_space<vmem>>, vector<1x4x8xbf16>
    %41 = vector.shape_cast %40 : vector<1x4x8xbf16> to vector<4x8xbf16>
    %cst_18 = arith.constant dense<0.000000e+00> : vector<16x8xf32>
    %42 = tpu.matmul %39, %41, %cst_18 {dimension_numbers = #tpu.dot_dimension_numbers<[1], [0], [0], [1], [0, 0, 1, 1], [], []>} : vector<16x4xbf16>, vector<4x8xbf16>, vector<16x8xf32> -> vector<16x8xf32>
    %43 = arith.addf %38, %42 : vector<16x8xf32>
    %44 = arith.truncf %34 : vector<16x4xf32> to vector<16x4xbf16>
    %c2 = arith.constant 2 : index
    %c0_19 = arith.constant 0 : index
    %c0_20 = arith.constant 0 : index
    %45 = vector.load %arg2[%c2, %c0_19, %c0_20] : memref<3x4x8xbf16, #tpu.memory_space<vmem>>, vector<1x4x8xbf16>
    %46 = vector.shape_cast %45 : vector<1x4x8xbf16> to vector<4x8xbf16>
    %cst_21 = arith.constant dense<0.000000e+00> : vector<16x8xf32>
    %47 = tpu.matmul %44, %46, %cst_21 {dimension_numbers = #tpu.dot_dimension_numbers<[1], [0], [0], [1], [0, 0, 1, 1], [], []>} : vector<16x4xbf16>, vector<4x8xbf16>, vector<16x8xf32> -> vector<16x8xf32>
    %48 = arith.addf %43, %47 : vector<16x8xf32>
    %49 = vector.broadcast %23 : vector<1x8xf32> to vector<16x8xf32>
    %50 = arith.mulf %48, %49 : vector<16x8xf32>
    %51 = vector.broadcast %24 : vector<1x8xf32> to vector<16x8xf32>
    %52 = arith.addf %50, %51 : vector<16x8xf32>
    %cst_22 = arith.constant 1.000000e-01 : f32
    %53 = vector.broadcast %cst_22 : f32 to vector<16x8xf32>
    %54 = arith.mulf %53, %52 : vector<16x8xf32>
    %55 = arith.maximumf %52, %54 : vector<16x8xf32>
    %c0_23 = arith.constant 0 : index
    %c0_24 = arith.constant 0 : index
    %56 = vector.load %arg6[%c0_23, %c0_24] : memref<1x16xf32, #tpu.memory_space<vmem>>, vector<1x16xf32>
    %c0_25 = arith.constant 0 : index
    %c0_26 = arith.constant 0 : index
    %57 = vector.load %arg7[%c0_25, %c0_26] : memref<1x16xf32, #tpu.memory_space<vmem>>, vector<1x16xf32>
    %c1_i32_27 = arith.constant 1 : i32
    %58 = tpu.dynamic_rotate %55 by %c1_i32_27 dim 0 : vector<16x8xf32>, i32 -> vector<16x8xf32>
    %cst_28 = arith.constant 0.000000e+00 : f32
    %59 = vector.shape_cast %18 : vector<16x1xi1> to vector<16x1xi1>
    %60 = vector.broadcast %59 : vector<16x1xi1> to vector<16x8xi1>
    %61 = vector.broadcast %cst_28 : f32 to vector<16x8xf32>
    %62 = arith.select %60, %61, %58 : vector<16x8xi1>, vector<16x8xf32>
    %c15_i32_29 = arith.constant 15 : i32
    %63 = tpu.dynamic_rotate %55 by %c15_i32_29 dim 0 : vector<16x8xf32>, i32 -> vector<16x8xf32>
    %cst_30 = arith.constant 0.000000e+00 : f32
    %64 = vector.shape_cast %20 : vector<16x1xi1> to vector<16x1xi1>
    %65 = vector.broadcast %64 : vector<16x1xi1> to vector<16x8xi1>
    %66 = vector.broadcast %cst_30 : f32 to vector<16x8xf32>
    %67 = arith.select %65, %66, %63 : vector<16x8xi1>, vector<16x8xf32>
    %68 = arith.truncf %62 : vector<16x8xf32> to vector<16x8xbf16>
    %c0_31 = arith.constant 0 : index
    %c0_32 = arith.constant 0 : index
    %c0_33 = arith.constant 0 : index
    %69 = vector.load %arg5[%c0_31, %c0_32, %c0_33] : memref<3x8x16xbf16, #tpu.memory_space<vmem>>, vector<1x8x16xbf16>
    %70 = vector.shape_cast %69 : vector<1x8x16xbf16> to vector<8x16xbf16>
    %cst_34 = arith.constant dense<0.000000e+00> : vector<16x16xf32>
    %71 = tpu.matmul %68, %70, %cst_34 {dimension_numbers = #tpu.dot_dimension_numbers<[1], [0], [0], [1], [0, 0, 1, 1], [], []>} : vector<16x8xbf16>, vector<8x16xbf16>, vector<16x16xf32> -> vector<16x16xf32>
    %72 = arith.truncf %55 : vector<16x8xf32> to vector<16x8xbf16>
    %c1_35 = arith.constant 1 : index
    %c0_36 = arith.constant 0 : index
    %c0_37 = arith.constant 0 : index
    %73 = vector.load %arg5[%c1_35, %c0_36, %c0_37] : memref<3x8x16xbf16, #tpu.memory_space<vmem>>, vector<1x8x16xbf16>
    %74 = vector.shape_cast %73 : vector<1x8x16xbf16> to vector<8x16xbf16>
    %cst_38 = arith.constant dense<0.000000e+00> : vector<16x16xf32>
    %75 = tpu.matmul %72, %74, %cst_38 {dimension_numbers = #tpu.dot_dimension_numbers<[1], [0], [0], [1], [0, 0, 1, 1], [], []>} : vector<16x8xbf16>, vector<8x16xbf16>, vector<16x16xf32> -> vector<16x16xf32>
    %76 = arith.addf %71, %75 : vector<16x16xf32>
    %77 = arith.truncf %67 : vector<16x8xf32> to vector<16x8xbf16>
    %c2_39 = arith.constant 2 : index
    %c0_40 = arith.constant 0 : index
    %c0_41 = arith.constant 0 : index
    %78 = vector.load %arg5[%c2_39, %c0_40, %c0_41] : memref<3x8x16xbf16, #tpu.memory_space<vmem>>, vector<1x8x16xbf16>
    %79 = vector.shape_cast %78 : vector<1x8x16xbf16> to vector<8x16xbf16>
    %cst_42 = arith.constant dense<0.000000e+00> : vector<16x16xf32>
    %80 = tpu.matmul %77, %79, %cst_42 {dimension_numbers = #tpu.dot_dimension_numbers<[1], [0], [0], [1], [0, 0, 1, 1], [], []>} : vector<16x8xbf16>, vector<8x16xbf16>, vector<16x16xf32> -> vector<16x16xf32>
    %81 = arith.addf %76, %80 : vector<16x16xf32>
    %82 = vector.broadcast %56 : vector<1x16xf32> to vector<16x16xf32>
    %83 = arith.mulf %81, %82 : vector<16x16xf32>
    %84 = vector.broadcast %57 : vector<1x16xf32> to vector<16x16xf32>
    %85 = arith.addf %83, %84 : vector<16x16xf32>
    %cst_43 = arith.constant 1.000000e-01 : f32
    %86 = vector.broadcast %cst_43 : f32 to vector<16x16xf32>
    %87 = arith.mulf %86, %85 : vector<16x16xf32>
    %88 = arith.maximumf %85, %87 : vector<16x16xf32>
    %c15_i32_44 = arith.constant 15 : i32
    %89 = tpu.dynamic_rotate %88 by %c15_i32_44 dim 0 : vector<16x16xf32>, i32 -> vector<16x16xf32>
    %90 = arith.maximumf %88, %89 : vector<16x16xf32>
    %c0_45 = arith.constant 0 : index
    %c0_46 = arith.constant 0 : index
    %91 = vector.load %arg9[%c0_45, %c0_46] : memref<16x16xf32, #tpu.memory_space<vmem>>, vector<16x16xf32>
    tpu.vector_store %arg9[%c0_45, %c0_46], %90 {strides = array<i32>} : memref<16x16xf32, #tpu.memory_space<vmem>>, vector<16x16xf32>,
    %c0_47 = arith.constant 0 : index
    %c0_48 = arith.constant 0 : index
    %92 = tpu.strided_load %arg9[%c0_47, %c0_48] {strides = array<i32: 2, 1>} : memref<16x16xf32, #tpu.memory_space<vmem>>, vector<8x16xf32>
    %c0_49 = arith.constant 0 : index
    %c0_50 = arith.constant 0 : index
    %93 = vector.load %arg8[%c0_49, %c0_50] : memref<8x16xf32, #tpu.memory_space<vmem>>, vector<8x16xf32>
    tpu.vector_store %arg8[%c0_49, %c0_50], %92 {strides = array<i32>} : memref<8x16xf32, #tpu.memory_space<vmem>>, vector<8x16xf32>,
    return
  }
  func.func @transform_0(%arg0: i32) -> (i32, i32) {
    %c0_i32 = arith.constant 0 : i32
    %c0_i32_0 = arith.constant 0 : i32
    return %arg0, %c0_i32 : i32, i32
  }
  func.func @transform_1(%arg0: i32) -> (i32, i32, i32) {
    %c0_i32 = arith.constant 0 : i32
    %c0_i32_0 = arith.constant 0 : i32
    %c0_i32_1 = arith.constant 0 : i32
    %c0_i32_2 = arith.constant 0 : i32
    return %c0_i32, %c0_i32_0, %c0_i32_1 : i32, i32, i32
  }
  func.func @transform_2(%arg0: i32) -> (i32, i32) {
    %c0_i32 = arith.constant 0 : i32
    %c0_i32_0 = arith.constant 0 : i32
    %c0_i32_1 = arith.constant 0 : i32
    return %c0_i32, %c0_i32_0 : i32, i32
  }
  func.func @transform_3(%arg0: i32) -> (i32, i32) {
    %c0_i32 = arith.constant 0 : i32
    %c0_i32_0 = arith.constant 0 : i32
    %c0_i32_1 = arith.constant 0 : i32
    return %c0_i32, %c0_i32_0 : i32, i32
  }
  func.func @transform_4(%arg0: i32) -> (i32, i32, i32) {
    %c0_i32 = arith.constant 0 : i32
    %c0_i32_0 = arith.constant 0 : i32
    %c0_i32_1 = arith.constant 0 : i32
    %c0_i32_2 = arith.constant 0 : i32
    return %c0_i32, %c0_i32_0, %c0_i32_1 : i32, i32, i32
  }
  func.func @transform_5(%arg0: i32) -> (i32, i32) {
    %c0_i32 = arith.constant 0 : i32
    %c0_i32_0 = arith.constant 0 : i32
    %c0_i32_1 = arith.constant 0 : i32
    return %c0_i32, %c0_i32_0 : i32, i32
  }
  func.func @transform_6(%arg0: i32) -> (i32, i32) {
    %c0_i32 = arith.constant 0 : i32
    %c0_i32_0 = arith.constant 0 : i32
    %c0_i32_1 = arith.constant 0 : i32
    return %c0_i32, %c0_i32_0 : i32, i32
  }
  func.func @transform_7(%arg0: i32) -> (i32, i32) {
    %c0_i32 = arith.constant 0 : i32
    %c0_i32_0 = arith.constant 0 : i32
    return %arg0, %c0_i32 : i32, i32
  }
}

</mosaic_0001>

<bundles_post_ra>
// kernel: basic_conv_block_forward.1
= control target key start
LH: loop header
LB: loop body
LE: loop exit
PB: predicated region body
PF: predicated region fallthrough
CT: control target
= control target key end

     0   :  { %12 = vsyncpa [#allocation4], 0  ;;  %s947_s0 = inlined_call_operand.vmem [shape: bf16[32,4], index: 0, kind: input, shape index: {}]   ;;  %s948_s1 = inlined_call_operand.vmem [shape: bf16[3,4,8], index: 1, kind: input, shape index: {}]   ;;  %s949_s2 = inlined_call_operand.vmem [shape: f32[1,8], index: 2, kind: input, shape index: {}]   ;;  %s950_s3 = inlined_call_operand.vmem [shape: f32[1,8], index: 3, kind: input, shape index: {}]   ;;  %s951_s4 = inlined_call_operand.vmem [shape: bf16[3,8,16], index: 4, kind: input, shape index: {}]   ;;  %s952_s5 = inlined_call_operand.vmem [shape: f32[1,16], index: 5, kind: input, shape index: {}]   ;;  %s953_s6 = inlined_call_operand.vmem [shape: f32[1,16], index: 6, kind: input, shape index: {}]   ;;  %s954_s7 = inlined_call_operand.hbm [shape: f32[16,16], index: 7, kind: output, shape index: {}]  }
   0x1   :  { %14 = vsyncpa [#allocation4 + $0x1], 0  ;;  %s788_s24 = smov 0   ;;  %s790_s25 = smov 0  }
   0x2   :  { %s792_s26 = smov 0   ;;  %s794_s27 = smov 0  }
   0x3 LB: > { %s809_s28 = sadd.s32 4294967295, %s746_s27   ;;  %s615_s29 = sadd.s32 4294967294, %s746_s27   ;;  %s746_s27 = sphi %s794_s27, %s964_s27   ;;  %s742_s26 = sphi %s792_s26, %s963_s26   ;;  %s738_s25 = sphi %s790_s25, %s962_s25   ;;  %s734_s24 = sphi %s788_s24, %s961_s24  }
   0x4   : > { %s813_s30 = sadd.s32 1, %s746_s27   ;;  %s179_s8 = sadd.s32 1, %s742_s26 }
   0x5   : > { %s176_s9 = ssub.s32 %s746_s27, %s813_s30  ;;  %p189_p0 = scmp.ne.s32.totalorder %s742_s26, %s738_s25 }
   0x6   : > { %p177_p1 = scmp.eq.s32.totalorder %s176_s9, 0  ;;  %p190_p2 = scmp.eq.s32.totalorder %s809_s28, 1 }
   0x7   : > { %p195_p3 = scmp.ne.s32.totalorder %s738_s25, %s734_s24  ;;  %p196_p4 = scmp.eq.s32.totalorder %s615_s29, 1 }
   0x8   : > { %s824_s10 = scalar_select %p177_p1, %s742_s26, %s179_s8  }
   0x9   : > { %p826_p5 = por %p190_p2, %p189_p0  ;;  %p830_p6 = por %p196_p4, %p195_p3 }
   0xa   : > { %p618_p7 = scmp.ge.s32.totalorder %s746_s27, 1  ;;  %p241_p8 = scmp.lt.s32.totalorder %s746_s27, 3 }
   0xc   : > { %p242_p9 = pnand %p618_p7, %p241_p8 }
   0xd   : > { %s620_s15 = sshll.u32 (!%p242_p9), %s809_s28, 1  ;;  %s270_s29 = sand.u32 (!%p242_p9), 1, %s738_s25  }
   0xe   : > { %245 = sbr.rel (%p242_p9) target bundleno = 353 (0x161), region = 48  ;;  %p274_p10 = scmp.lt.s32.totalorder (!%p242_p9), %s620_s15, 3 }
   0xf   : > { %s619_s8 = sshll.u32 (!%p242_p9), %s270_s29, 3  ;;  %s637_s9 = sshll.u32 (!%p242_p9), %s809_s28, 3 }
  0x10   : > { %s272_s16 = scalar_lea.vmem (!%p242_p9), [#allocation3], %s619_s8  ;;  %s541_s19 = scalar_lea.sflag (!%p242_p9), [#allocation4], %s270_s29 }
  0x11   : > { %s553_s17 = sshll.u32 (!%p242_p9), %s272_s16, 4  ;;  %s554_s17 = int_to_ptr.vmem [resolvable:$true] %s553_s17 }
  0x13   : > { %v622_v0 = vld [vmem:[%s948_s1 + $0x2] sm:$0x3]  ;;  %vm352_vm0 = vcmask 1041408   ;;  %v280_v1 = vlaneseq  ;;  %v340_v3 = vld [vmem:[%s948_s1] sm:$0x3]  ;;  %s966_s15 = smov (!%p274_p10, %s620_s15), 3 }
  0x14   : > { %v354_v2 = vsel %vm352_vm0, %v622_v0, 0  ;;  %v629_v4 = vld [vmem:[%s948_s1 + $0x4] sm:$0x3]  ;;  %v374_v5 = vsel %vm352_vm0, %v340_v3, 0  ;;  %s621_s20 = sshll.u32 %s966_s15, 2  ;;  %vm348_vm1 = vcmask 31744   ;;  %s551_s15 = scalar_lea.hbm %s954_s7, %s637_s9 }
  0x15   : > { %363 = vmatpush.bf16.msra.mxu0 %v354_v2  ;;  %v397_v6 = vsel %vm352_vm0, %v629_v4, 0  ;;  %v846_v7 = vshrl.u32 %v280_v1, 7  ;;  %383 = vmatpush.bf16.msra.mxu1 %v374_v5  ;;  %s277_s23 = scalar_lea.vmem %s947_s0, %s621_s20  ;;  %vm452_vm6 = vcmask 1043456   ;;  %v631_v29 = vld [vmem:[%s951_s4 + $0x4] sm:$0xf]  ;;  %vm448_vm7 = vcmask 64512  }
  0x16   : > { %406 = vmatpush.bf16.msra.mxu2 %v397_v6  ;;  %v640_v11 = vld [vmem:[%s277_s23] sm:$0xff]  ;;  %v454_v30 = vsel %vm452_vm6, %v631_v29, 0  ;;  %v634_v32 = vld [vmem:[%s951_s4 + $0x8] sm:$0xf]  ;;  %vm535_vm8 = vcmask 130048   ;;  %s555_s18 = sshll.u32 %s551_s15, 4  ;;  %s556_s18 = int_to_ptr.hbm [resolvable:$true] %s555_s18 }
  0x17   : > { %v282_v8 = vadd.s32 8, %v846_v7  ;;  %v287_v9 = vand.u32 15, %v846_v7  ;;  %v311_v12 = vld [vmem:[%s277_s23] sm:$0xff]   ;;  %vm319_vm3 = vcmp.lt.s32.totalorder %v846_v7, 1  ;;  %vm330_vm5 = vcmp.lt.s32.totalorder %v846_v7, 7  ;;  %463 = vmatpush.bf16.msra.mxu3 %v454_v30  ;;  %s698_s20 = sshra.s32 %s556_s18, 4  ;;  %s699_s20 = int_to_ptr.hbm [resolvable:$true] %s698_s20 }
  0x18   : > { %v313_v13 = vunpack.c.l.bf16 %v311_v12  ;;  %v314_v14 = vunpack.c.h.bf16 %v311_v12  ;;  %627 = vmatmul.msk.bf16.vlgmr.msra.gmra.mxu0 %vm348_vm1, %v640_v11  ;;  %v444_v31 = vld [vmem:[%s951_s4] sm:$0xf]  ;;  %v497_v34 = vsel %vm452_vm6, %v634_v32, 0  ;;  %s700_s21 = scalar_lea.hbm %s699_s20, 8  ;;  %s704_s23 = scalar_lea.hbm %s954_s7, 16 }
  0x19   : > { %v294_v10 = vand.u32 15, %v282_v8  ;;  %vm854_vm2 = vcmp.eq.s32.totalorder %v287_v9, 0  ;;  %v474_v33 = vsel %vm452_vm6, %v444_v31, 0  ;;  %506 = vmatpush.bf16.msrb.mxu1 %v497_v34  ;;  %v680_v38 = vld [vmem:[%s949_s2] ss:$0 sm:$0xff]  ;;  %p701_p11 = scmp.ne.s32.totalorder %s699_s20, %s700_s21  ;;  %p705_p0 = scmp.lt.s32.totalorder %s699_s20, %s954_s7 }
  0x1a   : > { %v317_v17 = vrot.slane %v313_v13, 7  ;;  %v318_v18 = vrot.slane %v314_v14, 7  ;;  %v328_v19 = vrot.slane %v313_v13, 1  ;;  %v329_v20 = vrot.slane %v314_v14, 1  ;;  %483 = vmatpush.bf16.msrb.mxu0 %v474_v33  ;;  %v681_v41 = vld [vmem:[%s950_s3] ss:$0 sm:$0xff]  ;;  %p706_p1 = scmp.lt.s32.totalorder %s704_s23, %s700_s21 }
  0x1b   : > { %vm859_vm4 = vcmp.eq.s32.totalorder %v294_v10, 15  ;;  %v682_v9 = vld [vmem:[%s952_s5] ss:$0 sm:$0xff]  ;;  %p702_p12 = pnand %p701_p11, %p826_p5 }
  0x1c   : > { %v320_v21 = vsel %vm319_vm3, %v317_v17, %v318_v18  ;;  %v321_v22 = vsel %vm319_vm3, %v318_v18, %v317_v17  ;;  %v331_v23 = vsel %vm330_vm5, %v328_v19, %v329_v20  ;;  %v332_v24 = vsel %vm330_vm5, %v329_v20, %v328_v19  ;;  %v683_v12 = vld [vmem:[%s953_s6] ss:$0 sm:$0xff]  ;;  %p707_p2 = por %p706_p1, %p705_p0 }
  0x1d   : > { %v326_v25 = vsel %vm854_vm2, 0.0, %v321_v22  ;;  %v338_v26 = vsel %vm859_vm4, 0.0, %v332_v24  ;;  %p703_p13 = pneg %p702_p12 }
  0x1e   : > { %v339_v27 = vpack.c.bf16 %v320_v21, %v326_v25  ;;  %v390_v28 = vpack.c.bf16 %v338_v26, %v331_v23 }
  0x1f   : > { %p708_p3 = pnand %p707_p2, %p703_p13 }
  0x20   : > { %628 = vmatmul.msk.bf16.vlgmr.msra.gmra.mxu1 %vm348_vm1, %v339_v27  ;;  %630 = vmatmul.msk.bf16.vlgmr.msra.gmra.mxu2 %vm348_vm1, %v390_v28 }
  0x95   : > { %v365_v36 = vpop.f32.mrf.mxu0 }
  0x9d   : > { %v385_v35 = vpop.f32.mrf.mxu1  ;;  %v367_v44 = vpop.f32.mrf.mxu0 }
  0x9e   : > { %v386_v37 = vadd.f32 %v385_v35, %v365_v36 }
  0xa3   : > { %v408_v39 = vpop.f32.mrf.mxu2 }
  0xa4   : > { %v413_v40 = vadd.f32 %v408_v39, %v386_v37 }
  0xa5   : > { %v387_v43 = vpop.f32.mrf.mxu1 }
  0xa6   : > { %v418_v42 = vmul.f32 %v680_v38, %v413_v40  ;;  %v388_v46 = vadd.f32 %v387_v43, %v367_v44 }
  0xa8   : > { %v423_v45 = vadd.f32 %v681_v41, %v418_v42 }
  0xaa   : > { %v425_v49 = vmul.f32 0.1, %v423_v45 }
  0xab   : > { %v410_v47 = vpop.f32.mrf.mxu2 }
  0xac   : > { %v414_v48 = vadd.f32 %v410_v47, %v388_v46  ;;  %v427_v52 = vmax.f32 %v423_v45, %v425_v49 }
  0xae   : > { %v419_v50 = vmul.f32 %v680_v38, %v414_v48  ;;  %v431_v55 = vrot.slane %v427_v52, 7  ;;  %v437_v56 = vrot.slane %v427_v52, 1 }
  0xb0   : > { %v424_v51 = vadd.f32 %v681_v41, %v419_v50 }
  0xb2   : > { %v426_v53 = vmul.f32 0.1, %v424_v51 }
  0xb4   : > { %v428_v54 = vmax.f32 %v424_v51, %v426_v53 }
  0xb6   : > { %v432_v57 = vrot.slane %v428_v54, 7  ;;  %v438_v58 = vrot.slane %v428_v54, 1  ;;  %v445_v59 = vpack.c.bf16 %v428_v54, %v427_v52 }
  0xb8   : > { %632 = vmatmul.msk.bf16.vlgmr.msra.gmra.mxu3 %vm448_vm7, %v445_v59  ;;  %v433_v60 = vsel %vm319_vm3, %v431_v55, %v432_v57  ;;  %v434_v61 = vsel %vm319_vm3, %v432_v57, %v431_v55  ;;  %v439_v62 = vsel %vm330_vm5, %v437_v56, %v438_v58  ;;  %v440_v63 = vsel %vm330_vm5, %v438_v58, %v437_v56 }
  0xb9   : > { %v435_v0 = vsel %vm854_vm2, 0.0, %v434_v61  ;;  %v442_v1 = vsel %vm859_vm4, 0.0, %v440_v63 }
  0xba   : > { %v443_v2 = vpack.c.bf16 %v433_v60, %v435_v0  ;;  %v490_v3 = vpack.c.bf16 %v442_v1, %v439_v62 }
  0xbc   : > { %633 = vmatmul.msk.bf16.vlgmr.msrb.gmra.mxu0 %vm448_vm7, %v443_v2  ;;  %635 = vmatmul.msk.bf16.vlgmr.msrb.gmra.mxu1 %vm448_vm7, %v490_v3 }
 0x139   : > { %v485_v4 = vpop.f32.mrf.mxu0  ;;  %v508_v5 = vpop.f32.mrf.mxu1 }
 0x13b   : > { %v465_v6 = vpop.f32.mrf.mxu3 }
 0x13c   : > { %v486_v8 = vadd.f32 %v485_v4, %v465_v6 }
 0x13e   : > { %v513_v10 = vadd.f32 %v508_v5, %v486_v8 }
 0x140   : > { %v518_v11 = vmul.f32 %v682_v9, %v513_v10 }
 0x141   : > { %v487_v13 = vpop.f32.mrf.mxu0  ;;  %v510_v17 = vpop.f32.mrf.mxu1 }
 0x142   : > { %v523_v15 = vadd.f32 %v683_v12, %v518_v11 }
 0x143   : > { %v467_v14 = vpop.f32.mrf.mxu3 }
 0x144   : > { %v488_v16 = vadd.f32 %v487_v13, %v467_v14  ;;  %v525_v19 = vmul.f32 0.1, %v523_v15 }
 0x146   : > { %v514_v18 = vadd.f32 %v510_v17, %v488_v16  ;;  %v527_v22 = vmax.f32 %v523_v15, %v525_v19 }
 0x148   : > { %v519_v20 = vmul.f32 %v682_v9, %v514_v18  ;;  %v529_v25 = vrot.slane %v527_v22, 1 }
 0x14a   : > { %v524_v21 = vadd.f32 %v683_v12, %v519_v20 }
 0x14c   : > { %v526_v23 = vmul.f32 0.1, %v524_v21 }
 0x14e   : > { %v528_v24 = vmax.f32 %v524_v21, %v526_v23 }
 0x150   : > { %v530_v26 = vrot.slane %v528_v24, 1 }
 0x152   : > { %v531_v27 = vsel %vm330_vm5, %v529_v25, %v530_v26  ;;  %v532_v28 = vsel %vm330_vm5, %v530_v26, %v529_v25 }
 0x153   : > { %v533_v29 = vmax.f32 %v527_v22, %v531_v27  ;;  %v534_v30 = vmax.f32 %v528_v24, %v532_v28 }
 0x155   : > { %536 = vst.msk [vmem:[#allocation2] sm:$0xff] %vm535_vm8, %v533_v29 }
 0x156   : > { %537 = vst.msk [vmem:[#allocation2 + $0x8] sm:$0xff] %vm535_vm8, %v534_v30 }
 0x15d   : > { %v538_v31 = vld [vmem:[#allocation2] ss:$2 sm:$0xff] }
 0x15e   : > { %539 = vst.msk [vmem:[%s272_s16] sm:$0xff] %vm535_vm8, %v538_v31 }
 0x15f   : > { %711 = shalt.err (!%p708_p3)
}
 0x160   : > { %641 = dma.vmem_to_hbm [thread:$0]  (%p826_p5), %s554_s17, 128, %s556_s18, %s541_s19  }
 0x161 PF: > { %p647_p4 = scmp.ge.s32.totalorder %s746_s27, 2  ;;  %s567_s29 = sand.u32 1, %s734_s24  }
 0x162   : > { %s568_s13 = scalar_lea.sflag [#allocation4], %s567_s29 }
 0x163   : > { %p644_p7 = pnand %p647_p4, %p830_p6 }
 0x165   : > { %p645_p8 = pneg %p644_p7 }
 0x167   : > { %729 = dma.done.wait (%p645_p8), %s568_s13, 128  }
 0x168   : > { %731 = vsyncadd (%p645_p8), %s568_s13, 4294967168  ;;  %p17_p9 = scmp.ge.s32.totalorder %s813_s30, 4   ;;  %s961_s24 = smov %s738_s25 }
 0x169   : > { %s962_s25 = smov %s742_s26  ;;  %s963_s26 = smov %s824_s10 }
 0x16a   : > { %s964_s27 = smov %s813_s30  ;;  %19 = sbr.rel (!%p17_p9) target bundleno = 3 (0x3), region = 87 }
 0x16f   :  { %574 = vsyncpa [#allocation4], 1 }
 0x170   :  { %576 = vsyncpa [#allocation4 + $0x1], 1 }

</bundles_post_ra>
